<compile_context>
chip_gen: v7x
topology: tpu7x:2x2x1
jax: 0.10.0
libtpu: 0.0.40
codegen_flags: <defaults>
</compile_context>

<pallas_src>
import functools

import jax
import jax.numpy as jnp
from jax.experimental import pallas as pl
from jax.experimental.pallas import tpu as pltpu


# ----------------------------- helpers ------------------------------------- #
def _round_up(x, m):
    return (x + m - 1) // m * m


def _tile_dim(dim, pref, quantum, min_tile):
    """Pick (tile, padded_dim): tile is a multiple of `quantum`, padded_dim a
    multiple of tile.  Prefers large tiles (<= pref) with minimal padding and
    never splits into tiles smaller than min_tile."""
    d = _round_up(dim, quantum)
    if d <= pref:
        return d, d                               # single tile, no inner split
    best_t, best_pad = pref, _round_up(d, pref)
    t = pref - quantum
    while t >= max(min_tile, quantum):
        p = _round_up(d, t)
        if p < best_pad:
            best_t, best_pad = t, p
        t -= quantum
    return best_t, best_pad


def _pad2(x, rows, cols):
    pr, pc = rows - x.shape[0], cols - x.shape[1]
    if pr or pc:
        x = jnp.pad(x, ((0, pr), (0, pc)))
    return x


# ----------------------------- kernels ------------------------------------- #
def _gcn_kernel(h_ref, w_ref, row_ref, o_ref):
    """out = relu(h @ W + row)   (full-K dot, row broadcast over rows)."""
    y = jnp.dot(h_ref[...], w_ref[...], preferred_element_type=jnp.float32)
    o_ref[...] = jnp.maximum(y + row_ref[...], 0.0).astype(o_ref.dtype)


def _sage_kernel(h_ref, w_ref, mean_ref, o_ref):
    """out = relu(h @ W + mean_row @ W).  W tile is resident; the 1-row
    matmul costs ~1/tm of the main dot, so recomputing it per step keeps both
    grid axes 'parallel' with no cross-iteration state."""
    row = jnp.dot(mean_ref[...], w_ref[...], preferred_element_type=jnp.float32)
    y = jnp.dot(h_ref[...], w_ref[...], preferred_element_type=jnp.float32)
    o_ref[...] = jnp.maximum(y + row, 0.0).astype(o_ref.dtype)


def _mean_rows_kernel(nb_ref, o_ref, acc_ref, *, inv_m):
    """row = mean over the true M neighbor rows (M-tiled, bf16 in, f32 acc)."""
    @pl.when(pl.program_id(0) == 0)
    def _():
        acc_ref[...] = jnp.zeros_like(acc_ref)

    acc_ref[...] += jnp.sum(nb_ref[...].astype(jnp.float32),
                            axis=0, keepdims=True)

    @pl.when(pl.program_id(0) == pl.num_programs(0) - 1)
    def _():
        o_ref[...] = acc_ref[...] * inv_m


# ----------------------------- prologue ------------------------------------ #
def _neighbor_mean(h_nb, cols_pad):
    """(1, cols_pad) f32 mean of h_nb rows; neighbors streamed as bf16,
    M-tiled so VMEM stays bounded for large neighbor sets."""
    m = h_nb.shape[0]
    m8 = _round_up(m, 8)
    # ~2 MiB per bf16 input buffer (double-buffered by the pipeline)
    rows_budget = max(8, ((2 * 1024 * 1024) // (cols_pad * 2)) // 8 * 8)
    tmm = min(m8, rows_budget)
    m_pad = _round_up(m8, tmm)
    nb = _pad2(h_nb, m_pad, cols_pad).astype(jnp.bfloat16)   # padded rows are 0

    return pl.pallas_call(
        functools.partial(_mean_rows_kernel, inv_m=1.0 / m),  # divide by true M
        out_shape=jax.ShapeDtypeStruct((1, cols_pad), jnp.float32),
        grid_spec=pltpu.PrefetchScalarGridSpec(
            num_scalar_prefetch=0,
            grid=(m_pad // tmm,),
            in_specs=[pl.BlockSpec((tmm, cols_pad), lambda s: (s, 0))],
            out_specs=pl.BlockSpec((1, cols_pad), lambda s: (0, 0)),
            scratch_shapes=[pltpu.VMEM((1, cols_pad), jnp.float32)],
        ),
        compiler_params=pltpu.CompilerParams(
            dimension_semantics=("arbitrary",)),
    )(nb)


# --------------------------- shared main call ------------------------------ #
def _prep(h_i, weight):
    n, f_in = h_i.shape
    f_out = weight.shape[1]
    k_pad = _round_up(f_in, 128)

    # tile preferences derived from K so the VMEM estimate stays in budget
    if k_pad <= 2048:
        pm, pn = 512, 1024
    elif k_pad <= 4096:
        pm, pn = 512, 512
    else:
        pm, pn = 256, 256
    tm, n_pad = _tile_dim(n, pm, 16, 256)        # rows: bf16 sublane quantum 16
    tn, f_pad = _tile_dim(f_out, pn, 128, 256)   # lanes: 128 quantum, >=256 tiles

    h_p = _pad2(h_i, n_pad, k_pad).astype(jnp.bfloat16)
    w_p = _pad2(weight, k_pad, f_pad).astype(jnp.bfloat16)
    meta = (n, f_out, n_pad, k_pad, f_pad, tm, tn)
    return h_p, w_p, meta


def _main_call(kernel, h_p, w_p, extra, extra_spec, meta):
    n, f_out, n_pad, k_pad, f_pad, tm, tn = meta
    # grid (j, i): column tiles outer, row tiles inner -> the W block index is
    # unchanged across consecutive i steps, so W is DMA'd once per j.
    grid = (f_pad // tn, n_pad // tm)

    est = (2 * (tm * k_pad + k_pad * tn) * 2      # double-buffered bf16 inputs
           + 2 * tm * tn * 4                      # double-buffered f32 output
           + 2 * max(f_pad, k_pad) * 4 + 4096)    # row/mean input + slack
    vmem_limit = int(min(60 * 1024 * 1024,
                         max(32 * 1024 * 1024, est * 5 // 4)))

    out = pl.pallas_call(
        kernel,
        out_shape=jax.ShapeDtypeStruct((n_pad, f_pad), jnp.float32),
        grid_spec=pltpu.PrefetchScalarGridSpec(
            num_scalar_prefetch=0,
            grid=grid,
            in_specs=[
                pl.BlockSpec((tm, k_pad), lambda j, i: (i, 0)),   # h rows
                pl.BlockSpec((k_pad, tn), lambda j, i: (0, j)),   # W: const over i
                extra_spec,
            ],
            out_specs=pl.BlockSpec((tm, tn), lambda j, i: (i, j)),
        ),
        compiler_params=pltpu.CompilerParams(
            dimension_semantics=("parallel", "parallel"),
            vmem_limit_bytes=vmem_limit),
    )(h_p, w_p, extra)

    if (n_pad, f_pad) != (n, f_out):
        out = out[:n, :f_out]
    return out


# ----------------------------- wrappers ------------------------------------ #
def gnn_layer_gcn(h_i, h_neighbors, weight, bias):
    h_p, w_p, meta = _prep(h_i, weight)
    n, f_out, n_pad, k_pad, f_pad, tm, tn = meta

    mean_row = _neighbor_mean(h_neighbors, f_pad)             # (1, f_pad) f32
    bias_p = jnp.pad(bias.astype(jnp.float32),
                     (0, f_pad - f_out)).reshape(1, f_pad)
    row = mean_row + bias_p                                   # tiny (1, f_pad) add

    extra_spec = pl.BlockSpec((1, tn), lambda j, i: (0, j))
    return _main_call(_gcn_kernel, h_p, w_p, row, extra_spec, meta)


def gnn_layer_graphsage(h_i, h_neighbors, weight):
    # mean(h_nb @ W) == mean(h_nb) @ W (linearity) -> compute the mean once,
    # multiply by the already-resident W tile inside the main kernel.
    h_p, w_p, meta = _prep(h_i, weight)
    n, f_out, n_pad, k_pad, f_pad, tm, tn = meta

    mean_row = _neighbor_mean(h_neighbors, k_pad).astype(jnp.bfloat16)  # (1, k_pad)

    extra_spec = pl.BlockSpec((1, k_pad), lambda j, i: (0, 0))
    return _main_call(_sage_kernel, h_p, w_p, mean_row, extra_spec, meta)


# ----------------------------- references ---------------------------------- #
def _q(x):  # emulate bf16 quantization applied to values streamed as bf16
    return x.astype(jnp.bfloat16).astype(jnp.float32)


def _gcn_ref_emulated(h_i, h_nb, w, b):
    y = jnp.dot(_q(h_i), _q(w), precision=jax.lax.Precision.HIGHEST)
    return jnp.maximum(y + b + jnp.mean(_q(h_nb), axis=0), 0.0)


def _sage_ref_emulated(h_i, h_nb, w):
    wq = _q(w)
    y = jnp.dot(_q(h_i), wq, precision=jax.lax.Precision.HIGHEST)
    row = jnp.dot(_q(jnp.mean(_q(h_nb), axis=0, keepdims=True)), wq,
                  precision=jax.lax.Precision.HIGHEST)
    return jnp.maximum(y + row, 0.0)


def _gcn_ref_f32(h_i, h_nb, w, b):
    return jnp.maximum(h_i @ w + b + jnp.mean(h_nb, axis=0), 0.0)


def _sage_ref_f32(h_i, h_nb, w):
    return jnp.maximum(h_i @ w + jnp.mean(h_nb @ w, axis=0), 0.0)


# ------------------------------- main -------------------------------------- #
if __name__ == "__main__":
    key = jax.random.PRNGKey(0)
    k_hi, k_nb_gcn, k_nb_sage, k_w = jax.random.split(key, 4)

    N, M = 8, 16                      # target nodes / neighbors
    in_features, out_features = 32, 32

    weight = jax.random.normal(k_w, (in_features, out_features), jnp.float32)
    bias = jnp.zeros((out_features,), jnp.float32)

    h_i = jax.random.normal(k_hi, (N, in_features), jnp.float32)
    h_nb_gcn = jax.random.normal(k_nb_gcn, (M, out_features), jnp.float32)
    h_nb_sage = jax.random.normal(k_nb_sage, (M, in_features), jnp.float32)

    # ---- gcn (default conv_type) ----
    out_gcn = jax.block_until_ready(gnn_layer_gcn(h_i, h_nb_gcn, weight, bias))
    assert out_gcn.shape == (N, out_features)
    assert jnp.allclose(out_gcn, _gcn_ref_emulated(h_i, h_nb_gcn, weight, bias),
                        atol=2e-3, rtol=2e-3)
    assert jnp.allclose(out_gcn, _gcn_ref_f32(h_i, h_nb_gcn, weight, bias),
                        atol=0.25, rtol=0.1)        # bf16-input quantization slack

    # ---- graphsage ----
    out_sage = jax.block_until_ready(gnn_layer_graphsage(h_i, h_nb_sage, weight))
    assert out_sage.shape == (N, out_features)
    assert jnp.allclose(out_sage, _sage_ref_emulated(h_i, h_nb_sage, weight),
                        atol=2e-3, rtol=2e-3)
    assert jnp.allclose(out_sage, _sage_ref_f32(h_i, h_nb_sage, weight),
                        atol=0.25, rtol=0.1)        # bf16 + mean-before-matmul slack

    print("KERNEL_OK")
</pallas_src>

<mosaic_0001>
module attributes {stable_mosaic.version = 11 : i64} {
  func.func @_mean_rows_kernel(%arg0: i32, %arg1: memref<16x128xbf16, #tpu.memory_space<vmem>>, %arg2: memref<1x128xf32, #tpu.memory_space<vmem>>, %arg3: memref<1x128xf32, #tpu.memory_space<vmem>>) attributes {dimension_semantics = [#tpu.dimension_semantics<arbitrary>], iteration_bounds = array<i64: 1>, scalar_prefetch = 0 : i64, scratch_operands = 1 : i64, tpu.core_type = #tpu.core_type<tc>, window_params = [{transform_indices = @transform_0, window_bounds = array<i64: 16, 128>}, {pipeline_mode = #tpu.pipeline_mode<synchronous>, transform_indices = @transform_1, window_bounds = array<i64: 1, 128>}]} {
    %c0_i32 = arith.constant 0 : i32
    %0 = arith.cmpi eq, %arg0, %c0_i32 : i32
    %1 = arith.extui %0 : i1 to i32
    %c0_i32_0 = arith.constant 0 : i32
    %2 = arith.cmpi ne, %1, %c0_i32_0 : i32
    scf.if %2 {
      %cst_8 = arith.constant 0.000000e+00 : f32
      %13 = vector.broadcast %cst_8 : f32 to vector<1x128xf32>
      %c0_9 = arith.constant 0 : index
      %c0_10 = arith.constant 0 : index
      %14 = vector.load %arg3[%c0_9, %c0_10] : memref<1x128xf32, #tpu.memory_space<vmem>>, vector<1x128xf32>
      tpu.vector_store %arg3[%c0_9, %c0_10], %13 {strides = array<i32>} : memref<1x128xf32, #tpu.memory_space<vmem>>, vector<1x128xf32>,
    } else {
    }
    %c0 = arith.constant 0 : index
    %c0_1 = arith.constant 0 : index
    %3 = vector.load %arg3[%c0, %c0_1] : memref<1x128xf32, #tpu.memory_space<vmem>>, vector<1x128xf32>
    %c0_2 = arith.constant 0 : index
    %c0_3 = arith.constant 0 : index
    %4 = vector.load %arg1[%c0_2, %c0_3] : memref<16x128xbf16, #tpu.memory_space<vmem>>, vector<16x128xbf16>
    %5 = arith.extf %4 : vector<16x128xbf16> to vector<16x128xf32>
    %cst = arith.constant dense<0.000000e+00> : vector<128xf32>
    %6 = vector.multi_reduction <add>, %5, %cst [0] : vector<16x128xf32> to vector<128xf32>
    %7 = vector.shape_cast %6 : vector<128xf32> to vector<1x128xf32>
    %8 = arith.addf %3, %7 : vector<1x128xf32>
    %c0_4 = arith.constant 0 : index
    %c0_5 = arith.constant 0 : index
    %9 = vector.load %arg3[%c0_4, %c0_5] : memref<1x128xf32, #tpu.memory_space<vmem>>, vector<1x128xf32>
    tpu.vector_store %arg3[%c0_4, %c0_5], %8 {strides = array<i32>} : memref<1x128xf32, #tpu.memory_space<vmem>>, vector<1x128xf32>,
    %c0_i32_6 = arith.constant 0 : i32
    %10 = arith.cmpi eq, %arg0, %c0_i32_6 : i32
    %11 = arith.extui %10 : i1 to i32
    %c0_i32_7 = arith.constant 0 : i32
    %12 = arith.cmpi ne, %11, %c0_i32_7 : i32
    scf.if %12 {
      %c0_8 = arith.constant 0 : index
      %c0_9 = arith.constant 0 : index
      %13 = vector.load %arg3[%c0_8, %c0_9] : memref<1x128xf32, #tpu.memory_space<vmem>>, vector<1x128xf32>
      %cst_10 = arith.constant 6.250000e-02 : f32
      %14 = vector.broadcast %cst_10 : f32 to vector<1x128xf32>
      %15 = arith.mulf %13, %14 : vector<1x128xf32>
      %c0_11 = arith.constant 0 : index
      %c0_12 = arith.constant 0 : index
      %16 = vector.load %arg2[%c0_11, %c0_12] : memref<1x128xf32, #tpu.memory_space<vmem>>, vector<1x128xf32>
      tpu.vector_store %arg2[%c0_11, %c0_12], %15 {strides = array<i32>} : memref<1x128xf32, #tpu.memory_space<vmem>>, vector<1x128xf32>,
    } else {
    }
    return
  }
  func.func @transform_0(%arg0: i32) -> (i32, i32) {
    %c0_i32 = arith.constant 0 : i32
    %c0_i32_0 = arith.constant 0 : i32
    return %arg0, %c0_i32 : i32, i32
  }
  func.func @transform_1(%arg0: i32) -> (i32, i32) {
    %c0_i32 = arith.constant 0 : i32
    %c0_i32_0 = arith.constant 0 : i32
    %c0_i32_1 = arith.constant 0 : i32
    return %c0_i32, %c0_i32_0 : i32, i32
  }
}

</mosaic_0001>

<bundles_post_ra>
// kernel: tpu_custom_call.1
= control target key start
LH: loop header
LB: loop body
LE: loop exit
PB: predicated region body
PF: predicated region fallthrough
CT: control target
= control target key end

     0   :  { %6 = vsyncpa [#allocation4], 0  ;;  %s159_s0 = inlined_call_operand.hbm [shape: bf16[16,128], index: 0, kind: input, shape index: {}]   ;;  %s160_s1 = inlined_call_operand.hbm [shape: f32[1,128], index: 1, kind: output, shape index: {}]  }
   0x1   :  { %7 = vsyncpa [#allocation5], 0  ;;  %s120_s6 = smov [#allocation3]   ;;  %s72_s10 = scalar_lea.hbm %s159_s0, 128 }
   0x2   :  { %s13_s7 = sshll.u32 %s120_s6, 4  ;;  %p73_p0 = scmp.ne.s32.totalorder %s159_s0, %s72_s10  ;;  %s14_s7 = int_to_ptr.vmem [resolvable:$true] %s13_s7 }
   0x3   :  { %p76_p1 = scmp.lt.u32.totalorder %s72_s10, %s159_s0 }
   0x5   :  { %p78_p2 = pnand %p76_p1, %p73_p0 }
   0x7   :  { %81 = shalt.err (!%p78_p2)
}
   0x8   :  { %s82_s15 = scalar_lea.vmem %s14_s7, 128  ;;  %p87_p4 = scmp.lt.s32.totalorder %s14_s7, %s14_s7 }
   0x9   :  { %p83_p3 = scmp.ne.s32.totalorder %s14_s7, %s82_s15  ;;  %p88_p5 = scmp.lt.s32.totalorder %s82_s15, %s82_s15 }
   0xb   :  { %p89_p6 = por %p88_p5, %p87_p4 }
   0xd   :  { %p90_p7 = pnand %p89_p6, %p83_p3 }
   0xf   :  { %93 = shalt.err (!%p90_p7)
}
  0x10   :  { %s121_s16 = smov 64   ;;  %s122_s17 = smov 4  }
  0x11   :  { %19 = dma.hbm_to_vmem [thread:$0]  %s159_s0, 128, %s14_s7, [#allocation4], %s121_s16, %s121_s16, %s122_s17  }
  0x12   :  { %116 = dma.done.wait [#allocation4], 128  }
  0x13   :  { %117 = vsyncadd [#allocation4], 4294967168  ;;  %v123_v0 = vmov 0.0   ;;  %v64_v1 = vld [vmem:[#allocation3] sm:$0xff]   ;;  %s124_s20 = smov [#allocation6]  }
  0x14   :  { %27 = vst [vmem:[#allocation2] sm:$0x1] %v123_v0  ;;  %v65_v2 = vunpack.c.l.bf16 %v64_v1  ;;  %v66_v3 = vunpack.c.h.bf16 %v64_v1  ;;  %s54_s21 = sshll.u32 %s124_s20, 4  ;;  %s55_s21 = int_to_ptr.vmem [resolvable:$true] %s54_s21 }
  0x15   :  { %s94_s0 = scalar_lea.vmem %s55_s21, 16  ;;  %s98_s22 = scalar_lea.vmem %s55_s21, 32 }
  0x16   :  { %v33_v4 = vadd.f32 %v66_v3, %v65_v2  ;;  %p95_p8 = scmp.ne.s32.totalorder %s55_s21, %s94_s0  ;;  %p99_p9 = scmp.lt.s32.totalorder %s55_s21, %s55_s21 }
  0x17   :  { %p100_p10 = scmp.lt.s32.totalorder %s98_s22, %s94_s0 }
  0x18   :  { %v34_v5 = vrot.slane %v33_v4, 4 }
  0x19   :  { %p101_p11 = por %p100_p10, %p99_p9 }
  0x1a   :  { %v35_v6 = vadd.f32 %v34_v5, %v33_v4 }
  0x1b   :  { %v28_v10 = vld [vmem:[#allocation2] sm:$0x1]  ;;  %p102_p12 = pnand %p101_p11, %p95_p8 }
  0x1c   :  { %v36_v7 = vrot.slane %v35_v6, 2 }
  0x1e   :  { %v37_v8 = vadd.f32 %v36_v7, %v35_v6 }
  0x20   :  { %v38_v9 = vrot.slane %v37_v8, 1 }
  0x22   :  { %v39_v11 = vadd.f32 %v38_v9, %v37_v8 }
  0x24   :  { %v40_v12 = vadd.f32 %v39_v11, %v28_v10 }
  0x26   :  { %41 = vst [vmem:[#allocation2] sm:$0x1] %v40_v12 }
  0x2d   :  { %v45_v13 = vld [vmem:[#allocation2] sm:$0x1] }
  0x2e   :  { %v46_v14 = vmul.f32 0.0625, %v45_v13 }
  0x30   :  { %47 = vst [vmem:[#allocation6] sm:$0x1] %v46_v14 }
  0x31   :  { %105 = shalt.err (!%p102_p12)
}
  0x32   :  { %s106_s25 = scalar_lea.hbm %s160_s1, 16 }
  0x33   :  { %p107_p13 = scmp.ne.s32.totalorder %s160_s1, %s106_s25  ;;  %p110_p0 = scmp.lt.u32.totalorder %s106_s25, %s160_s1 }
  0x35   :  { %p112_p1 = pnand %p110_p0, %p107_p13 }
  0x37   :  { %115 = shalt.err (!%p112_p1)
}
  0x38   :  { %57 = dma.vmem_to_hbm [thread:$0]  %s55_s21, 16, %s160_s1, [#allocation5]  }
  0x39   :  { %118 = dma.done.wait [#allocation5], 16  }
  0x3a   :  { %119 = vsyncadd [#allocation5], 4294967280 }
  0x3b   :  { %61 = vsyncpa [#allocation4], 1 }
  0x3c   :  { %62 = vsyncpa [#allocation5], 1 }

</bundles_post_ra>
